<compile_context>
chip_gen: v5e
topology: v5e:2x2
jax: 0.10.0
libtpu: 0.0.40
codegen_flags: <defaults>
</compile_context>

<pallas_src>
import functools

import jax
import jax.numpy as jnp
from jax.experimental import pallas as pl
from jax.experimental.pallas import tpu as pltpu

_OFFSET = 100000.0      # masked-entry offset, identical to the PyTorch reference
_MIN_INIT = 1e30        # init value for the running min/max accumulators
_LANE = 128
_SUBLANE = 8
_G_MAX = 32             # max unrolled lane groups per grid step (code-size bound)


def _round_up(x, m):
    return (x + m - 1) // m * m


def _divisors(n):
    out = set()
    i = 1
    while i * i <= n:
        if n % i == 0:
            out.add(i)
            out.add(n // i)
        i += 1
    return sorted(out)


def _vmem_limit_bytes():
    cap = 64 * 1024 * 1024          # conservative default = v7x per-TC VMEM
    try:
        info = pltpu.get_tpu_info()
        c = getattr(info, "vmem_capacity_bytes", None)
        if c:
            cap = int(c)
    except Exception:
        pass
    return (3 * cap) // 4           # 48 MiB on v7x, 96 MiB on v5e/v6e


def _etox_kernel(e_ref, mask_ref, w_ref, b_ref, invd_ref, out_ref,
                 s0_ref, s1_ref, s2_ref, mn_ref, mx_ref, *, de, wg):
    # e_ref:    (1, ti, W)        E block, packed (j, de) on lanes (W = G*wg)
    # mask_ref: (1, nsteps, W)    per-batch mask rows, resident in VMEM
    # w_ref:    (4, de, dxp)      Linear weight slabs for [m, min, max, std]
    # b_ref:    (1, dxp)          bias (padded)
    # invd_ref: (bs,) in SMEM     per-batch 1 / sum(mask)
    # out_ref:  (1, ti, dxp)
    # scratch:  five (ti, wg) f32 accumulators, resident across the j grid axis
    b = pl.program_id(0)
    j = pl.program_id(2)
    nj = pl.num_programs(2)

    @pl.when(j == 0)
    def _init():
        s0_ref[...] = jnp.zeros_like(s0_ref)
        s1_ref[...] = jnp.zeros_like(s1_ref)
        s2_ref[...] = jnp.zeros_like(s2_ref)
        mn_ref[...] = jnp.full_like(mn_ref, _MIN_INIT)
        mx_ref[...] = jnp.full_like(mx_ref, -_MIN_INIT)

    # Mask row for this j step (dynamic sublane index into the resident block;
    # no per-step mask DMA / semaphore wait).
    mrow = mask_ref[0, pl.ds(j, 1), :]                      # (1, W) f32

    n_groups = e_ref.shape[-1] // wg
    for g in range(n_groups):
        lo = g * wg
        eg = e_ref[0, :, lo:lo + wg].astype(jnp.float32)    # (ti, wg)
        mg = mrow[:, lo:lo + wg]                            # (1, wg)
        off = (1.0 - mg) * _OFFSET                          # hoisted; 0 where valid
        em = eg * mg
        # NOTE: s0 sums over ALL j (masked included), as the reference does.
        s0_ref[...] += eg
        s1_ref[...] += em
        s2_ref[...] += eg * em
        mn_ref[...] = jnp.minimum(mn_ref[...], eg + off)
        mx_ref[...] = jnp.maximum(mx_ref[...], eg - off)

    @pl.when(j == nj - 1)
    def _finalize():
        inv_d = invd_ref[b]                                 # SMEM scalar

        def coset_reduce(x, op):
            # Collapse the wg // de j-slots interleaved along lanes (lane l
            # holds (j_local, d) with d = l % de).  No-op when de == wg.
            r = x
            s = de
            while s < wg:
                r = op(r, pltpu.roll(r, shift=s, axis=1))
                s *= 2
            return r[:, :de]                                # (ti, de)

        m_sum = coset_reduce(s0_ref[...], jnp.add)
        s1 = coset_reduce(s1_ref[...], jnp.add)
        s2 = coset_reduce(s2_ref[...], jnp.add)
        mn = coset_reduce(mn_ref[...], jnp.minimum)
        mx = coset_reduce(mx_ref[...], jnp.maximum)

        m = m_sum * inv_d
        # sum((E - m)^2 * mask) / denom == (S2 - 2*m*S1) / denom + m^2
        std = (s2 - 2.0 * m * s1) * inv_d + m * m

        # Linear(4*de -> dx): four K=de dots on the weight slabs avoid the
        # sub-128 lane-offset relayout a concat to (ti, 4*de) would need.
        out = jnp.dot(m, w_ref[0], preferred_element_type=jnp.float32)
        out = out + jnp.dot(mn, w_ref[1], preferred_element_type=jnp.float32)
        out = out + jnp.dot(mx, w_ref[2], preferred_element_type=jnp.float32)
        out = out + jnp.dot(std, w_ref[3], preferred_element_type=jnp.float32)
        out_ref[0] = (out + b_ref[...]).astype(out_ref.dtype)


def etox_pallas(E, e_mask2, w, bias, *, block_rows=None, block_lanes=None,
                stage_bf16=False):
    """EtoX forward.

    E: (bs, n, n, de), e_mask2: (bs, 1, n, 1), w: (4*de, dx), bias: (dx,).
    """
    bs, n, n2, de = E.shape
    assert n == n2
    dx = w.shape[-1]
    out_dtype = E.dtype

    # ---- feature dim: make de and 128 nested (divides or is a multiple).
    if de < _LANE and _LANE % de != 0:
        de_p = 1 << (de - 1).bit_length()
    elif de > _LANE and de % _LANE != 0:
        de_p = _round_up(de, _LANE)
    else:
        de_p = de
    wg = max(_LANE, de_p)                      # lane-group width (mult of 128)

    # ---- pad the reduced (j) axis so the packed row is a multiple of wg, and
    #      the kept (i) axis to a multiple of 8 (valid sublane tiling).
    n_j = n if de_p >= _LANE else _round_up(n, _LANE // de_p)
    n_i = _round_up(n, _SUBLANE)
    Ep = E
    if de_p != de or n_j != n or n_i != n:
        Ep = jnp.pad(E, ((0, 0), (0, n_i - n), (0, n_j - n), (0, de_p - de)))
    L = n_j * de_p

    e_dtype = jnp.bfloat16 if stage_bf16 else Ep.dtype
    E2 = Ep.reshape(bs, n_i, L).astype(e_dtype)          # (j, de) packed on lanes

    # Mask over the reduced axis, repeated per feature so it matches the packed
    # lane layout; padded j entries are masked out (they contribute nothing).
    maskj = e_mask2.reshape(bs, n).astype(jnp.float32)
    maskl = jnp.repeat(jnp.pad(maskj, ((0, 0), (0, n_j - n))), de_p, axis=1)

    # Per-batch 1/denominator (sum of the ORIGINAL mask); SMEM scalar, so the
    # kernel never does a cross-lane reduce or a divide.
    inv_denom = (1.0 / jnp.sum(maskj, axis=1)).astype(jnp.float32)   # (bs,)

    # Lane-dense output: pad dx to a multiple of 128 (zero cols), slice after.
    dxp = _round_up(dx, _LANE)
    w_p = jnp.zeros((4, de_p, dxp), jnp.float32)
    w_p = w_p.at[:, :de, :dx].set(w.astype(jnp.float32).reshape(4, de, dx))
    b_p = jnp.zeros((1, dxp), jnp.float32).at[:, :dx].set(
        bias.astype(jnp.float32).reshape(1, dx))

    # ---- generation-aware tiling ---------------------------------------
    vmem_limit = _vmem_limit_bytes()
    budget_e = vmem_limit // 6                 # per E buffer (double-buffered)
    itemsize = jnp.dtype(e_dtype).itemsize

    # Reduce-axis block width W: as wide as possible (long contiguous DMA rows,
    # fewer grid steps / accumulator RMWs), capped by the unroll + VMEM budget.
    if block_lanes is not None:
        W = int(block_lanes)
        assert W % wg == 0 and L % W == 0
    else:
        q_cap = max(1, min(_G_MAX, budget_e // (_SUBLANE * wg * itemsize)))
        W = wg * max(d for d in _divisors(L // wg) if d <= q_cap)

    # Kept-axis block ti: largest divisor (multiple of 8) within budget, kept
    # small enough that bs * (n_i // ti) covers both v7x TensorCores.
    cands = sorted(d for d in _divisors(n_i) if d % _SUBLANE == 0 or d == n_i)
    if block_rows is not None:
        ti = int(block_rows)
        assert n_i % ti == 0 and (ti % _SUBLANE == 0 or ti == n_i)
    else:
        fit = [d for d in cands if d * W * itemsize <= budget_e] or [cands[0]]
        ti = fit[-1]
        for want in (4, 2, 1):                 # megacore occupancy preference
            ok = [d for d in fit if bs * (n_i // d) >= want]
            if ok:
                ti = max(ok)
                break

        def _est(ti_, W_):
            return (2 * ti_ * W_ * itemsize      # E (double-buffered)
                    + 2 * ti_ * dxp * 4          # output
                    + 5 * ti_ * wg * 4           # accumulator scratch
                    + 2 * L * 4                  # resident mask
                    + 8 * de_p * dxp * 4         # weights
                    + (1 << 20))                 # slack

        while _est(ti, W) > vmem_limit and ti > fit[0]:
            ti = max(d for d in fit if d < ti)
        while _est(ti, W) > vmem_limit and W > wg:
            W = wg * max(d for d in _divisors(L // wg) if d * wg < W)

    n_steps = L // W
    mask3 = maskl.reshape(bs, n_steps, W)
    grid = (bs, n_i // ti, n_steps)

    kernel = functools.partial(_etox_kernel, de=de_p, wg=wg)

    out = pl.pallas_call(
        kernel,
        out_shape=jax.ShapeDtypeStruct((bs, n_i, dxp), out_dtype),
        grid=grid,
        in_specs=[
            pl.BlockSpec((1, ti, W), lambda bb, i, j: (bb, i, j)),
            pl.BlockSpec((1, n_steps, W), lambda bb, i, j: (bb, 0, 0)),
            pl.BlockSpec((4, de_p, dxp), lambda bb, i, j: (0, 0, 0)),
            pl.BlockSpec((1, dxp), lambda bb, i, j: (0, 0)),
            pl.BlockSpec(memory_space=pltpu.MemorySpace.SMEM),
        ],
        out_specs=pl.BlockSpec((1, ti, dxp), lambda bb, i, j: (bb, i, 0)),
        scratch_shapes=[pltpu.VMEM((ti, wg), jnp.float32) for _ in range(5)],
        compiler_params=pltpu.CompilerParams(
            dimension_semantics=("parallel", "parallel", "arbitrary"),
            vmem_limit_bytes=vmem_limit,
        ),
    )(E2, mask3, w_p, b_p, inv_denom)
    return out[:, :n, :dx]


def etox_ref(E, e_mask2, w, bias):
    """Pure-JAX reference mirroring the PyTorch forward exactly."""
    bs, n, _, de = E.shape
    m2 = jnp.broadcast_to(e_mask2, (bs, n, n, de)).astype(jnp.float32)
    fi = 1.0 - m2
    Ef = E.astype(jnp.float32)
    denom = m2.sum(axis=2)
    m = Ef.sum(axis=2) / denom
    mi = jnp.min(Ef + 100000.0 * fi, axis=2)
    ma = jnp.max(Ef - 100000.0 * fi, axis=2)
    std = jnp.sum((Ef - m[:, :, None, :]) ** 2 * m2, axis=2) / denom
    z = jnp.concatenate([m, mi, ma, std], axis=2)
    return z @ w.astype(jnp.float32) + bias.astype(jnp.float32)


if __name__ == "__main__":
    key = jax.random.PRNGKey(0)

    def run_case(case_id, bs, n, de, dx, block_rows=None, block_lanes=None,
                 stage_bf16=False, atol=1e-4, rtol=1e-4):
        ks = jax.random.split(jax.random.fold_in(key, case_id), 4)
        E = jax.random.normal(ks[0], (bs, n, n, de), dtype=jnp.float32)
        e_mask2 = (jax.random.uniform(ks[1], (bs, 1, n, 1)) > 0.3).astype(jnp.float32)
        e_mask2 = e_mask2.at[:, :, 0, :].set(1.0)      # >= 1 valid entry per row
        w = jax.random.normal(ks[2], (4 * de, dx), dtype=jnp.float32) * 0.1
        b = jax.random.normal(ks[3], (dx,), dtype=jnp.float32) * 0.1

        out = jax.block_until_ready(
            etox_pallas(E, e_mask2, w, b, block_rows=block_rows,
                        block_lanes=block_lanes, stage_bf16=stage_bf16))
        ref = etox_ref(E, e_mask2, w, b)
        assert out.shape == (bs, n, dx)
        err = float(jnp.max(jnp.abs(out - ref)))
        assert jnp.allclose(out, ref, atol=atol, rtol=rtol), \
            f"case {case_id}: mismatch vs reference (max err {err})"

    # 1) small case: the whole packed row fits one block (single j step).
    run_case(0, bs=2, n=16, de=8, dx=16)
    # 2) forced multi i-tile / multi j-step: exercises the streamed accumulators.
    run_case(1, bs=2, n=32, de=8, dx=16, block_rows=8, block_lanes=128)
    # 3) awkward shapes (de does not divide 128, n not a multiple of 8):
    #    exercises the de / j / i zero-padding paths.
    run_case(2, bs=1, n=12, de=6, dx=10)
    # 4) bf16-staged E (halves HBM read traffic on v6e/v7x); looser tolerance.
    run_case(3, bs=2, n=32, de=8, dx=16, stage_bf16=True, atol=5e-2, rtol=5e-2)

    print("KERNEL_OK")
</pallas_src>

<mosaic_0001>
module attributes {stable_mosaic.version = 11 : i64} {
  func.func @_etox_kernel(%arg0: i32, %arg1: i32, %arg2: i32, %arg3: memref<1x8x128xf32, #tpu.memory_space<vmem>>, %arg4: memref<1x1x128xf32, #tpu.memory_space<vmem>>, %arg5: memref<4x8x128xf32, #tpu.memory_space<vmem>>, %arg6: memref<1x128xf32, #tpu.memory_space<vmem>>, %arg7: memref<2xf32, #tpu.memory_space<smem>>, %arg8: memref<1x8x128xf32, #tpu.memory_space<vmem>>, %arg9: memref<8x128xf32, #tpu.memory_space<vmem>>, %arg10: memref<8x128xf32, #tpu.memory_space<vmem>>, %arg11: memref<8x128xf32, #tpu.memory_space<vmem>>, %arg12: memref<8x128xf32, #tpu.memory_space<vmem>>, %arg13: memref<8x128xf32, #tpu.memory_space<vmem>>) attributes {dimension_semantics = [#tpu.dimension_semantics<parallel>, #tpu.dimension_semantics<parallel>, #tpu.dimension_semantics<arbitrary>], iteration_bounds = array<i64: 2, 2, 1>, scalar_prefetch = 0 : i64, scratch_operands = 5 : i64, tpu.core_type = #tpu.core_type<tc>, window_params = [{transform_indices = @transform_0, window_bounds = array<i64: 1, 8, 128>}, {transform_indices = @transform_1, window_bounds = array<i64: 1, 1, 128>}, {pipeline_mode = #tpu.pipeline_mode<synchronous>, transform_indices = @transform_2, window_bounds = array<i64: 4, 8, 128>}, {pipeline_mode = #tpu.pipeline_mode<synchronous>, transform_indices = @transform_3, window_bounds = array<i64: 1, 128>}, {transform_indices = @transform_4, window_bounds = array<i64: 2>}, {transform_indices = @transform_5, window_bounds = array<i64: 1, 8, 128>}]} {
    %c0_i32 = arith.constant 0 : i32
    %0 = arith.cmpi eq, %arg2, %c0_i32 : i32
    %1 = arith.extui %0 : i1 to i32
    %c0_i32_0 = arith.constant 0 : i32
    %2 = arith.cmpi ne, %1, %c0_i32_0 : i32
    scf.if %2 {
      %cst_28 = arith.constant 0.000000e+00 : f32
      %37 = vector.broadcast %cst_28 : f32 to vector<8x128xf32>
      %c0_29 = arith.constant 0 : index
      %c0_30 = arith.constant 0 : index
      %38 = vector.load %arg9[%c0_29, %c0_30] : memref<8x128xf32, #tpu.memory_space<vmem>>, vector<8x128xf32>
      tpu.vector_store %arg9[%c0_29, %c0_30], %37 {strides = array<i32>} : memref<8x128xf32, #tpu.memory_space<vmem>>, vector<8x128xf32>,
      %cst_31 = arith.constant 0.000000e+00 : f32
      %39 = vector.broadcast %cst_31 : f32 to vector<8x128xf32>
      %c0_32 = arith.constant 0 : index
      %c0_33 = arith.constant 0 : index
      %40 = vector.load %arg10[%c0_32, %c0_33] : memref<8x128xf32, #tpu.memory_space<vmem>>, vector<8x128xf32>
      tpu.vector_store %arg10[%c0_32, %c0_33], %39 {strides = array<i32>} : memref<8x128xf32, #tpu.memory_space<vmem>>, vector<8x128xf32>,
      %cst_34 = arith.constant 0.000000e+00 : f32
      %41 = vector.broadcast %cst_34 : f32 to vector<8x128xf32>
      %c0_35 = arith.constant 0 : index
      %c0_36 = arith.constant 0 : index
      %42 = vector.load %arg11[%c0_35, %c0_36] : memref<8x128xf32, #tpu.memory_space<vmem>>, vector<8x128xf32>
      tpu.vector_store %arg11[%c0_35, %c0_36], %41 {strides = array<i32>} : memref<8x128xf32, #tpu.memory_space<vmem>>, vector<8x128xf32>,
      %cst_37 = arith.constant 1.000000e+30 : f32
      %43 = vector.broadcast %cst_37 : f32 to vector<8x128xf32>
      %c0_38 = arith.constant 0 : index
      %c0_39 = arith.constant 0 : index
      %44 = vector.load %arg12[%c0_38, %c0_39] : memref<8x128xf32, #tpu.memory_space<vmem>>, vector<8x128xf32>
      tpu.vector_store %arg12[%c0_38, %c0_39], %43 {strides = array<i32>} : memref<8x128xf32, #tpu.memory_space<vmem>>, vector<8x128xf32>,
      %cst_40 = arith.constant -1.000000e+30 : f32
      %45 = vector.broadcast %cst_40 : f32 to vector<8x128xf32>
      %c0_41 = arith.constant 0 : index
      %c0_42 = arith.constant 0 : index
      %46 = vector.load %arg13[%c0_41, %c0_42] : memref<8x128xf32, #tpu.memory_space<vmem>>, vector<8x128xf32>
      tpu.vector_store %arg13[%c0_41, %c0_42], %45 {strides = array<i32>} : memref<8x128xf32, #tpu.memory_space<vmem>>, vector<8x128xf32>,
    } else {
    }
    %c0 = arith.constant 0 : index
    %3 = arith.index_cast %arg2 : i32 to index
    %c0_1 = arith.constant 0 : index
    %4 = vector.load %arg4[%c0, %3, %c0_1] : memref<1x1x128xf32, #tpu.memory_space<vmem>>, vector<1x1x128xf32>
    %5 = vector.shape_cast %4 : vector<1x1x128xf32> to vector<1x128xf32>
    %c0_2 = arith.constant 0 : index
    %c0_3 = arith.constant 0 : index
    %c0_4 = arith.constant 0 : index
    %6 = vector.load %arg3[%c0_2, %c0_3, %c0_4] : memref<1x8x128xf32, #tpu.memory_space<vmem>>, vector<1x8x128xf32>
    %7 = vector.shape_cast %6 : vector<1x8x128xf32> to vector<8x128xf32>
    %cst = arith.constant 1.000000e+00 : f32
    %8 = vector.broadcast %cst : f32 to vector<1x128xf32>
    %9 = arith.subf %8, %5 : vector<1x128xf32>
    %cst_5 = arith.constant 1.000000e+05 : f32
    %10 = vector.broadcast %cst_5 : f32 to vector<1x128xf32>
    %11 = arith.mulf %9, %10 : vector<1x128xf32>
    %12 = vector.broadcast %5 : vector<1x128xf32> to vector<8x128xf32>
    %13 = arith.mulf %7, %12 : vector<8x128xf32>
    %c0_6 = arith.constant 0 : index
    %c0_7 = arith.constant 0 : index
    %14 = vector.load %arg9[%c0_6, %c0_7] : memref<8x128xf32, #tpu.memory_space<vmem>>, vector<8x128xf32>
    %15 = arith.addf %14, %7 : vector<8x128xf32>
    %c0_8 = arith.constant 0 : index
    %c0_9 = arith.constant 0 : index
    %16 = vector.load %arg9[%c0_8, %c0_9] : memref<8x128xf32, #tpu.memory_space<vmem>>, vector<8x128xf32>
    tpu.vector_store %arg9[%c0_8, %c0_9], %15 {strides = array<i32>} : memref<8x128xf32, #tpu.memory_space<vmem>>, vector<8x128xf32>,
    %c0_10 = arith.constant 0 : index
    %c0_11 = arith.constant 0 : index
    %17 = vector.load %arg10[%c0_10, %c0_11] : memref<8x128xf32, #tpu.memory_space<vmem>>, vector<8x128xf32>
    %18 = arith.addf %17, %13 : vector<8x128xf32>
    %c0_12 = arith.constant 0 : index
    %c0_13 = arith.constant 0 : index
    %19 = vector.load %arg10[%c0_12, %c0_13] : memref<8x128xf32, #tpu.memory_space<vmem>>, vector<8x128xf32>
    tpu.vector_store %arg10[%c0_12, %c0_13], %18 {strides = array<i32>} : memref<8x128xf32, #tpu.memory_space<vmem>>, vector<8x128xf32>,
    %c0_14 = arith.constant 0 : index
    %c0_15 = arith.constant 0 : index
    %20 = vector.load %arg11[%c0_14, %c0_15] : memref<8x128xf32, #tpu.memory_space<vmem>>, vector<8x128xf32>
    %21 = arith.mulf %7, %13 : vector<8x128xf32>
    %22 = arith.addf %20, %21 : vector<8x128xf32>
    %c0_16 = arith.constant 0 : index
    %c0_17 = arith.constant 0 : index
    %23 = vector.load %arg11[%c0_16, %c0_17] : memref<8x128xf32, #tpu.memory_space<vmem>>, vector<8x128xf32>
    tpu.vector_store %arg11[%c0_16, %c0_17], %22 {strides = array<i32>} : memref<8x128xf32, #tpu.memory_space<vmem>>, vector<8x128xf32>,
    %c0_18 = arith.constant 0 : index
    %c0_19 = arith.constant 0 : index
    %24 = vector.load %arg12[%c0_18, %c0_19] : memref<8x128xf32, #tpu.memory_space<vmem>>, vector<8x128xf32>
    %25 = vector.broadcast %11 : vector<1x128xf32> to vector<8x128xf32>
    %26 = arith.addf %7, %25 : vector<8x128xf32>
    %27 = arith.minimumf %24, %26 : vector<8x128xf32>
    %c0_20 = arith.constant 0 : index
    %c0_21 = arith.constant 0 : index
    %28 = vector.load %arg12[%c0_20, %c0_21] : memref<8x128xf32, #tpu.memory_space<vmem>>, vector<8x128xf32>
    tpu.vector_store %arg12[%c0_20, %c0_21], %27 {strides = array<i32>} : memref<8x128xf32, #tpu.memory_space<vmem>>, vector<8x128xf32>,
    %c0_22 = arith.constant 0 : index
    %c0_23 = arith.constant 0 : index
    %29 = vector.load %arg13[%c0_22, %c0_23] : memref<8x128xf32, #tpu.memory_space<vmem>>, vector<8x128xf32>
    %30 = vector.broadcast %11 : vector<1x128xf32> to vector<8x128xf32>
    %31 = arith.subf %7, %30 : vector<8x128xf32>
    %32 = arith.maximumf %29, %31 : vector<8x128xf32>
    %c0_24 = arith.constant 0 : index
    %c0_25 = arith.constant 0 : index
    %33 = vector.load %arg13[%c0_24, %c0_25] : memref<8x128xf32, #tpu.memory_space<vmem>>, vector<8x128xf32>
    tpu.vector_store %arg13[%c0_24, %c0_25], %32 {strides = array<i32>} : memref<8x128xf32, #tpu.memory_space<vmem>>, vector<8x128xf32>,
    %c0_i32_26 = arith.constant 0 : i32
    %34 = arith.cmpi eq, %arg2, %c0_i32_26 : i32
    %35 = arith.extui %34 : i1 to i32
    %c0_i32_27 = arith.constant 0 : i32
    %36 = arith.cmpi ne, %35, %c0_i32_27 : i32
    scf.if %36 {
      %37 = arith.index_cast %arg0 : i32 to index
      %38 = memref.load %arg7[%37] : memref<2xf32, #tpu.memory_space<smem>>
      %c0_28 = arith.constant 0 : index
      %c0_29 = arith.constant 0 : index
      %39 = vector.load %arg9[%c0_28, %c0_29] : memref<8x128xf32, #tpu.memory_space<vmem>>, vector<8x128xf32>
      %c8_i32 = arith.constant 8 : i32
      %40 = tpu.dynamic_rotate %39 by %c8_i32 dim 1 : vector<8x128xf32>, i32 -> vector<8x128xf32>
      %41 = arith.addf %39, %40 : vector<8x128xf32>
      %c16_i32 = arith.constant 16 : i32
      %42 = tpu.dynamic_rotate %41 by %c16_i32 dim 1 : vector<8x128xf32>, i32 -> vector<8x128xf32>
      %43 = arith.addf %41, %42 : vector<8x128xf32>
      %c32_i32 = arith.constant 32 : i32
      %44 = tpu.dynamic_rotate %43 by %c32_i32 dim 1 : vector<8x128xf32>, i32 -> vector<8x128xf32>
      %45 = arith.addf %43, %44 : vector<8x128xf32>
      %c64_i32 = arith.constant 64 : i32
      %46 = tpu.dynamic_rotate %45 by %c64_i32 dim 1 : vector<8x128xf32>, i32 -> vector<8x128xf32>
      %47 = arith.addf %45, %46 : vector<8x128xf32>
      %48 = vector.extract_strided_slice %47 {offsets = [0, 0], sizes = [8, 8], strides = [1, 1]} : vector<8x128xf32> to vector<8x8xf32>
      %c0_30 = arith.constant 0 : index
      %c0_31 = arith.constant 0 : index
      %49 = vector.load %arg10[%c0_30, %c0_31] : memref<8x128xf32, #tpu.memory_space<vmem>>, vector<8x128xf32>
      %c8_i32_32 = arith.constant 8 : i32
      %50 = tpu.dynamic_rotate %49 by %c8_i32_32 dim 1 : vector<8x128xf32>, i32 -> vector<8x128xf32>
      %51 = arith.addf %49, %50 : vector<8x128xf32>
      %c16_i32_33 = arith.constant 16 : i32
      %52 = tpu.dynamic_rotate %51 by %c16_i32_33 dim 1 : vector<8x128xf32>, i32 -> vector<8x128xf32>
      %53 = arith.addf %51, %52 : vector<8x128xf32>
      %c32_i32_34 = arith.constant 32 : i32
      %54 = tpu.dynamic_rotate %53 by %c32_i32_34 dim 1 : vector<8x128xf32>, i32 -> vector<8x128xf32>
      %55 = arith.addf %53, %54 : vector<8x128xf32>
      %c64_i32_35 = arith.constant 64 : i32
      %56 = tpu.dynamic_rotate %55 by %c64_i32_35 dim 1 : vector<8x128xf32>, i32 -> vector<8x128xf32>
      %57 = arith.addf %55, %56 : vector<8x128xf32>
      %58 = vector.extract_strided_slice %57 {offsets = [0, 0], sizes = [8, 8], strides = [1, 1]} : vector<8x128xf32> to vector<8x8xf32>
      %c0_36 = arith.constant 0 : index
      %c0_37 = arith.constant 0 : index
      %59 = vector.load %arg11[%c0_36, %c0_37] : memref<8x128xf32, #tpu.memory_space<vmem>>, vector<8x128xf32>
      %c8_i32_38 = arith.constant 8 : i32
      %60 = tpu.dynamic_rotate %59 by %c8_i32_38 dim 1 : vector<8x128xf32>, i32 -> vector<8x128xf32>
      %61 = arith.addf %59, %60 : vector<8x128xf32>
      %c16_i32_39 = arith.constant 16 : i32
      %62 = tpu.dynamic_rotate %61 by %c16_i32_39 dim 1 : vector<8x128xf32>, i32 -> vector<8x128xf32>
      %63 = arith.addf %61, %62 : vector<8x128xf32>
      %c32_i32_40 = arith.constant 32 : i32
      %64 = tpu.dynamic_rotate %63 by %c32_i32_40 dim 1 : vector<8x128xf32>, i32 -> vector<8x128xf32>
      %65 = arith.addf %63, %64 : vector<8x128xf32>
      %c64_i32_41 = arith.constant 64 : i32
      %66 = tpu.dynamic_rotate %65 by %c64_i32_41 dim 1 : vector<8x128xf32>, i32 -> vector<8x128xf32>
      %67 = arith.addf %65, %66 : vector<8x128xf32>
      %68 = vector.extract_strided_slice %67 {offsets = [0, 0], sizes = [8, 8], strides = [1, 1]} : vector<8x128xf32> to vector<8x8xf32>
      %c0_42 = arith.constant 0 : index
      %c0_43 = arith.constant 0 : index
      %69 = vector.load %arg12[%c0_42, %c0_43] : memref<8x128xf32, #tpu.memory_space<vmem>>, vector<8x128xf32>
      %c8_i32_44 = arith.constant 8 : i32
      %70 = tpu.dynamic_rotate %69 by %c8_i32_44 dim 1 : vector<8x128xf32>, i32 -> vector<8x128xf32>
      %71 = arith.minimumf %69, %70 : vector<8x128xf32>
      %c16_i32_45 = arith.constant 16 : i32
      %72 = tpu.dynamic_rotate %71 by %c16_i32_45 dim 1 : vector<8x128xf32>, i32 -> vector<8x128xf32>
      %73 = arith.minimumf %71, %72 : vector<8x128xf32>
      %c32_i32_46 = arith.constant 32 : i32
      %74 = tpu.dynamic_rotate %73 by %c32_i32_46 dim 1 : vector<8x128xf32>, i32 -> vector<8x128xf32>
      %75 = arith.minimumf %73, %74 : vector<8x128xf32>
      %c64_i32_47 = arith.constant 64 : i32
      %76 = tpu.dynamic_rotate %75 by %c64_i32_47 dim 1 : vector<8x128xf32>, i32 -> vector<8x128xf32>
      %77 = arith.minimumf %75, %76 : vector<8x128xf32>
      %78 = vector.extract_strided_slice %77 {offsets = [0, 0], sizes = [8, 8], strides = [1, 1]} : vector<8x128xf32> to vector<8x8xf32>
      %c0_48 = arith.constant 0 : index
      %c0_49 = arith.constant 0 : index
      %79 = vector.load %arg13[%c0_48, %c0_49] : memref<8x128xf32, #tpu.memory_space<vmem>>, vector<8x128xf32>
      %c8_i32_50 = arith.constant 8 : i32
      %80 = tpu.dynamic_rotate %79 by %c8_i32_50 dim 1 : vector<8x128xf32>, i32 -> vector<8x128xf32>
      %81 = arith.maximumf %79, %80 : vector<8x128xf32>
      %c16_i32_51 = arith.constant 16 : i32
      %82 = tpu.dynamic_rotate %81 by %c16_i32_51 dim 1 : vector<8x128xf32>, i32 -> vector<8x128xf32>
      %83 = arith.maximumf %81, %82 : vector<8x128xf32>
      %c32_i32_52 = arith.constant 32 : i32
      %84 = tpu.dynamic_rotate %83 by %c32_i32_52 dim 1 : vector<8x128xf32>, i32 -> vector<8x128xf32>
      %85 = arith.maximumf %83, %84 : vector<8x128xf32>
      %c64_i32_53 = arith.constant 64 : i32
      %86 = tpu.dynamic_rotate %85 by %c64_i32_53 dim 1 : vector<8x128xf32>, i32 -> vector<8x128xf32>
      %87 = arith.maximumf %85, %86 : vector<8x128xf32>
      %88 = vector.extract_strided_slice %87 {offsets = [0, 0], sizes = [8, 8], strides = [1, 1]} : vector<8x128xf32> to vector<8x8xf32>
      %89 = vector.broadcast %38 : f32 to vector<8x8xf32>
      %90 = arith.mulf %48, %89 : vector<8x8xf32>
      %cst_54 = arith.constant 2.000000e+00 : f32
      %91 = vector.broadcast %cst_54 : f32 to vector<8x8xf32>
      %92 = arith.mulf %91, %90 : vector<8x8xf32>
      %93 = arith.mulf %92, %58 : vector<8x8xf32>
      %94 = arith.subf %68, %93 : vector<8x8xf32>
      %95 = vector.broadcast %38 : f32 to vector<8x8xf32>
      %96 = arith.mulf %94, %95 : vector<8x8xf32>
      %97 = arith.mulf %90, %90 : vector<8x8xf32>
      %98 = arith.addf %96, %97 : vector<8x8xf32>
      %c0_55 = arith.constant 0 : index
      %c0_56 = arith.constant 0 : index
      %c0_57 = arith.constant 0 : index
      %99 = vector.load %arg5[%c0_55, %c0_56, %c0_57] : memref<4x8x128xf32, #tpu.memory_space<vmem>>, vector<1x8x128xf32>
      %100 = vector.shape_cast %99 : vector<1x8x128xf32> to vector<8x128xf32>
      %cst_58 = arith.constant dense<0.000000e+00> : vector<8x128xf32>
      %101 = tpu.matmul %90, %100, %cst_58 {dimension_numbers = #tpu.dot_dimension_numbers<[1], [0], [0], [1], [0, 0, 1, 1], [], []>} : vector<8x8xf32>, vector<8x128xf32>, vector<8x128xf32> -> vector<8x128xf32>
      %c1 = arith.constant 1 : index
      %c0_59 = arith.constant 0 : index
      %c0_60 = arith.constant 0 : index
      %102 = vector.load %arg5[%c1, %c0_59, %c0_60] : memref<4x8x128xf32, #tpu.memory_space<vmem>>, vector<1x8x128xf32>
      %103 = vector.shape_cast %102 : vector<1x8x128xf32> to vector<8x128xf32>
      %cst_61 = arith.constant dense<0.000000e+00> : vector<8x128xf32>
      %104 = tpu.matmul %78, %103, %cst_61 {dimension_numbers = #tpu.dot_dimension_numbers<[1], [0], [0], [1], [0, 0, 1, 1], [], []>} : vector<8x8xf32>, vector<8x128xf32>, vector<8x128xf32> -> vector<8x128xf32>
      %105 = arith.addf %101, %104 : vector<8x128xf32>
      %c2 = arith.constant 2 : index
      %c0_62 = arith.constant 0 : index
      %c0_63 = arith.constant 0 : index
      %106 = vector.load %arg5[%c2, %c0_62, %c0_63] : memref<4x8x128xf32, #tpu.memory_space<vmem>>, vector<1x8x128xf32>
      %107 = vector.shape_cast %106 : vector<1x8x128xf32> to vector<8x128xf32>
      %cst_64 = arith.constant dense<0.000000e+00> : vector<8x128xf32>
      %108 = tpu.matmul %88, %107, %cst_64 {dimension_numbers = #tpu.dot_dimension_numbers<[1], [0], [0], [1], [0, 0, 1, 1], [], []>} : vector<8x8xf32>, vector<8x128xf32>, vector<8x128xf32> -> vector<8x128xf32>
      %109 = arith.addf %105, %108 : vector<8x128xf32>
      %c3 = arith.constant 3 : index
      %c0_65 = arith.constant 0 : index
      %c0_66 = arith.constant 0 : index
      %110 = vector.load %arg5[%c3, %c0_65, %c0_66] : memref<4x8x128xf32, #tpu.memory_space<vmem>>, vector<1x8x128xf32>
      %111 = vector.shape_cast %110 : vector<1x8x128xf32> to vector<8x128xf32>
      %cst_67 = arith.constant dense<0.000000e+00> : vector<8x128xf32>
      %112 = tpu.matmul %98, %111, %cst_67 {dimension_numbers = #tpu.dot_dimension_numbers<[1], [0], [0], [1], [0, 0, 1, 1], [], []>} : vector<8x8xf32>, vector<8x128xf32>, vector<8x128xf32> -> vector<8x128xf32>
      %113 = arith.addf %109, %112 : vector<8x128xf32>
      %c0_68 = arith.constant 0 : index
      %c0_69 = arith.constant 0 : index
      %114 = vector.load %arg6[%c0_68, %c0_69] : memref<1x128xf32, #tpu.memory_space<vmem>>, vector<1x128xf32>
      %115 = vector.broadcast %114 : vector<1x128xf32> to vector<8x128xf32>
      %116 = arith.addf %113, %115 : vector<8x128xf32>
      %c0_70 = arith.constant 0 : index
      %c0_71 = arith.constant 0 : index
      %c0_72 = arith.constant 0 : index
      %117 = vector.load %arg8[%c0_70, %c0_71, %c0_72] : memref<1x8x128xf32, #tpu.memory_space<vmem>>, vector<1x8x128xf32>
      %118 = vector.shape_cast %117 : vector<1x8x128xf32> to vector<8x128xf32>
      %119 = vector.shape_cast %116 : vector<8x128xf32> to vector<1x8x128xf32>
      tpu.vector_store %arg8[%c0_70, %c0_71, %c0_72], %119 {strides = array<i32>} : memref<1x8x128xf32, #tpu.memory_space<vmem>>, vector<1x8x128xf32>,
    } else {
    }
    return
  }
  func.func @transform_0(%arg0: i32, %arg1: i32, %arg2: i32) -> (i32, i32, i32) {
    %c0_i32 = arith.constant 0 : i32
    return %arg0, %arg1, %arg2 : i32, i32, i32
  }
  func.func @transform_1(%arg0: i32, %arg1: i32, %arg2: i32) -> (i32, i32, i32) {
    %c0_i32 = arith.constant 0 : i32
    %c0_i32_0 = arith.constant 0 : i32
    %c0_i32_1 = arith.constant 0 : i32
    return %arg0, %c0_i32, %c0_i32_0 : i32, i32, i32
  }
  func.func @transform_2(%arg0: i32, %arg1: i32, %arg2: i32) -> (i32, i32, i32) {
    %c0_i32 = arith.constant 0 : i32
    %c0_i32_0 = arith.constant 0 : i32
    %c0_i32_1 = arith.constant 0 : i32
    %c0_i32_2 = arith.constant 0 : i32
    return %c0_i32, %c0_i32_0, %c0_i32_1 : i32, i32, i32
  }
  func.func @transform_3(%arg0: i32, %arg1: i32, %arg2: i32) -> (i32, i32) {
    %c0_i32 = arith.constant 0 : i32
    %c0_i32_0 = arith.constant 0 : i32
    %c0_i32_1 = arith.constant 0 : i32
    return %c0_i32, %c0_i32_0 : i32, i32
  }
  func.func @transform_4(%arg0: i32, %arg1: i32, %arg2: i32) -> i32 {
    %c0_i32 = arith.constant 0 : i32
    %c0_i32_0 = arith.constant 0 : i32
    return %c0_i32 : i32
  }
  func.func @transform_5(%arg0: i32, %arg1: i32, %arg2: i32) -> (i32, i32, i32) {
    %c0_i32 = arith.constant 0 : i32
    %c0_i32_0 = arith.constant 0 : i32
    return %arg0, %arg1, %c0_i32 : i32, i32, i32
  }
}

</mosaic_0001>

<bundles_post_ra>
// kernel: tpu_custom_call.1
= control target key start
LH: loop header
LB: loop body
LE: loop exit
PB: predicated region body
PF: predicated region fallthrough
CT: control target
= control target key end

     0   :  { %s1388_s0 = inlined_call_operand.hbm [shape: f32[2,16,128], index: 0, kind: input, shape index: {}]   ;;  %s1389_s1 = inlined_call_operand.hbm [shape: f32[2,1,128], index: 1, kind: input, shape index: {}]   ;;  %s1390_s2 = inlined_call_operand.hbm [shape: f32[4,8,128], index: 2, kind: input, shape index: {}]   ;;  %s1391_s3 = inlined_call_operand.vmem [shape: f32[1,128], index: 3, kind: input, shape index: {}]   ;;  %s1392_s4 = inlined_call_operand.vmem [shape: f32[2], index: 4, kind: input, shape index: {}]   ;;  %s1393_s5 = inlined_call_operand.hbm [shape: f32[2,16,128], index: 5, kind: output, shape index: {}]  }
   0x1   :  { %1399 = sst [smem:[#allocation27_spill]] %s1390_s2 }
   0x2   :  { %1400 = sst [smem:[#allocation28_spill]] %s1392_s4 }
   0x3   :  { %10 = vsyncpa [#allocation8], 0 }
   0x4   :  { %12 = vsyncpa [#allocation8 + $0x1], 0 }
   0x5   :  { %13 = vsyncpa [#allocation12], 0 }
   0x6   :  { %15 = vsyncpa [#allocation12 + $0x1], 0 }
   0x7   :  { %16 = vsyncpa [#allocation10], 0 }
   0x8   :  { %17 = vsyncpa [#allocation9], 0 }
   0x9   :  { %19 = vsyncpa [#allocation9 + $0x1], 0  ;;  %s1145_s18 = smov 0   ;;  %s1147_s19 = smov 0  }
   0xa   :  { %s1149_s20 = smov 0   ;;  %s1151_s21 = smov 0  }
   0xb   :  { %s1153_s22 = smov 0   ;;  %s1155_s23 = smov 0  }
   0xc   :  { %s1157_s24 = smov 0   ;;  %s1159_s25 = smov 0  }
   0xd   :  { %s1161_s26 = smov 0   ;;  %s1163_s27 = smov 0  }
   0xe   :  { %s1165_s28 = smov 0  }
   0xf LB: > { %1401 = sst [smem:[#allocation21_spill]] %s1077_s21  ;;  %s1201_s29 = sadd.s32 4294967295, %s1105_s28   ;;  %s1105_s28 = sphi %s1165_s28, %s25_s28   ;;  %s1101_s27 = sphi %s1163_s27, %s1429_s27   ;;  %s1097_s26 = sphi %s1161_s26, %s1428_s26   ;;  %s1093_s25 = sphi %s1159_s25, %s1427_s25   ;;  %s1089_s24 = sphi %s1157_s24, %s1426_s24   ;;  %s1085_s23 = sphi %s1155_s23, %s1418_s23   ;;  %s1081_s22 = sphi %s1153_s22, %s1425_s22   ;;  %s1077_s21 = sphi %s1151_s21, %s1424_s21   ;;  %s1073_s20 = sphi %s1149_s20, %s1423_s20   ;;  %s1069_s19 = sphi %s1147_s19, %s1422_s19   ;;  %s1065_s18 = sphi %s1145_s18, %s1421_s18  }
  0x10   : > { %1402 = sst [smem:[#allocation22_spill]] %s1085_s23  ;;  %p709_p0 = scmp.ge.s32.totalorder %s1105_s28, 1 }
  0x11   : > { %p69_p1 = scmp.eq.s32.totalorder %s1201_s29, 0  ;;  %p196_p2 = scmp.lt.s32.totalorder %s1105_s28, 5 }
  0x12   : > { %s1403_s2 = sld [smem:[#allocation27_spill]]  ;;  %s1107_s9 = smov [#allocation13]  }
  0x13   : > { %p1209_p3 = pnand %p709_p0, %p196_p2  ;;  %s209_s10 = sshll.u32 %s1107_s9, 4  ;;  %s210_s10 = int_to_ptr.vmem [resolvable:$true] %s209_s10 }
  0x14   : > { %s1405_s4 = sld [smem:[#allocation28_spill]]  ;;  %s1108_s14 = smov 128  }
  0x15   : > { %p744_p4 = pneg %p1209_p3  ;;  %s1109_s15 = smov 8  }
  0x16   : > { %s1110_s16 = smov [#allocation14]   ;;  %s708_s17 = sadd.s32 4294967294, %s1105_s28  }
  0x17   : > { %p745_p5 = pnand %p744_p4, %p69_p1  ;;  %s40_s30 = sadd.s32 1, %s1097_s26 }
  0x18   : > { %s207_s7 = sshll.u32 %s1403_s2, 4  ;;  %p42_p6 = scmp.ge.s32.totalorder %s40_s30, 2  ;;  %s208_s7 = int_to_ptr.hbm [resolvable:$true] %s207_s7 }
  0x19   : > { %747 = dma.hbm_to_vmem [thread:$0]  (!%p745_p5), %s208_s7, 512, %s210_s10, [#allocation12], %s1108_s14, %s1108_s14, %s1109_s15  }
  0x1a   : > { %s225_s13 = sshll.u32 %s1405_s4, 4  ;;  %s44_s6 = sadd.s32 1, %s1101_s27  ;;  %s226_s13 = int_to_ptr.vmem [resolvable:$true] %s225_s13 }
  0x1b   : > { %750 = dma.vmem_to_smem (!%p745_p5), %s226_s13, 16, %s1110_s16, [#allocation10]  }
  0x1c   : > { %s55_s9 = sadd.s32 1, %s1085_s23  ;;  %p62_p7 = scmp.ne.s32.totalorder %s1085_s23, %s1081_s22 }
  0x1d   : > { %s1431_s30 = smov (%p42_p6, %s40_s30), 0  ;;  %s1433_s6 = smov (!%p42_p6, %s44_s6), %s1101_s27 }
  0x1e   : > { %1406 = sst [smem:[#allocation23_spill]] %s1431_s30  ;;  %s49_s11 = ssub.s32 %s1097_s26, %s1431_s30 }
  0x1f   : > { %p63_p8 = scmp.eq.s32.totalorder %s1105_s28, 0  ;;  %p46_p9 = scmp.ge.s32.totalorder %s1433_s6, 2 }
  0x20   : > { %p68_p10 = scmp.ne.s32.totalorder %s1081_s22, %s1077_s21  ;;  %p183_p12 = scmp.eq.s32.totalorder %s1201_s29, 3 }
  0x21   : > { %p1236_p11 = por %p63_p8, %p62_p7  ;;  %s1435_s6 = smov (%p46_p9, %s1433_s6), 0 }
  0x22   : > { %1408 = sst [smem:[#allocation24_spill]] %s1435_s6  ;;  %p1245_p13 = por %p69_p1, %p68_p10 }
  0x23   : > { %p1249_p0 = por %p183_p12, %p62_p7  ;;  %s48_s13 = ssub.s32 %s1101_s27, %s1435_s6 }
  0x24   : > { %p189_p2 = scmp.eq.s32.totalorder %s708_s17, 3  ;;  %s50_s14 = sor.u32 %s49_s11, %s48_s13 }
  0x25   : > { %p79_p4 = scmp.eq.s32.totalorder %s48_s13, 0  ;;  %p53_p5 = scmp.eq.s32.totalorder %s50_s14, 0 }
  0x26   : > { %p1255_p6 = por %p189_p2, %p68_p10  ;;  %p764_p9 = scmp.lt.s32.totalorder %s1105_s28, 4 }
  0x27   : > { %s236_s16 = sand.u32 1, %s1085_s23   ;;  %s714_s17 = sshll.u32 %s1101_s27, 1 }
  0x28   : > { %s1411_s15 = scalar_select %p1255_p6, 1, 0 }
  0x29   : > { %s1262_s2 = scalar_select %p53_p5, %s1085_s23, %s55_s9  }
  0x2a   : > { %1412 = sst [smem:[#allocation25_spill]] %s1411_s15  ;;  %s713_s4 = sshll.u32 %s236_s16, 3 }
  0x2b   : > { %1413 = sst [smem:[#allocation26_spill]] %s1262_s2  ;;  %s245_s11 = sadd.s32 %s1097_s26, %s714_s17 }
  0x2c   : > { %s240_s14 = scalar_lea.vmem [#allocation7], %s713_s4  ;;  %s715_s30 = sshll.u32 %s245_s11, 3 }
  0x2d   : > { %s251_s6 = sshll.u32 %s240_s14, 4  ;;  %s247_s9 = scalar_lea.hbm %s1388_s0, %s715_s30  ;;  %s252_s6 = int_to_ptr.vmem [resolvable:$true] %s251_s6 }
  0x2e   : > { %p752_p7 = pnand %p764_p9, %p1236_p11  ;;  %s249_s2 = sshll.u32 %s247_s9, 4  ;;  %s250_s2 = int_to_ptr.hbm [resolvable:$true] %s249_s2 }
  0x2f   : > { %s237_s23 = scalar_lea.sflag [#allocation8], %s236_s16  ;;  %s81_s17 = sadd.s32 1, %s1073_s20 }
  0x30   : > { %754 = dma.hbm_to_vmem [thread:$0]  (!%p752_p7), %s250_s2, 128, %s252_s6, %s237_s23  }
  0x31   : > { %s1276_s4 = scalar_select %p79_p4, %s1073_s20, %s81_s17  }
  0x32   : > { %p88_p10 = scmp.ne.s32.totalorder %s1073_s20, %s1069_s19  ;;  %p94_p12 = scmp.ne.s32.totalorder %s1069_s19, %s1065_s18 }
  0x33   : > { %s258_s11 = sand.u32 1, %s1105_s28   ;;  %s260_s14 = sand.u32 1, %s1073_s20  }
  0x34   : > { %p90_p2 = por %p88_p10, %p63_p8  ;;  %p1288_p5 = por %p94_p12, %p69_p1 }
  0x35   : > { %s264_s15 = scalar_lea.hbm %s1389_s1, %s1101_s27  ;;  %s261_s2 = scalar_lea.vmem [#allocation11], %s260_s14 }
  0x36   : > { %s268_s23 = sshll.u32 %s261_s2, 4  ;;  %s266_s6 = sshll.u32 %s264_s15, 4  ;;  %s269_s23 = int_to_ptr.vmem [resolvable:$true] %s268_s23  ;;  %s267_s6 = int_to_ptr.hbm [resolvable:$true] %s266_s6 }
  0x37   : > { %p755_p11 = pnand %p764_p9, %p90_p2  ;;  %s259_s18 = scalar_lea.sflag [#allocation12], %s258_s11 }
  0x38   : > { %277 = sbr.rel (%p1209_p3) target bundleno = 671 (0x29f), region = 40  ;;  %s1301_s13 = sand.u32 (!%p1209_p3), 1, %s1081_s22  }
  0x39   : > { %757 = dma.hbm_to_vmem [thread:$0]  (!%p755_p11), %s267_s6, 16, %s269_s23, %s259_s18  }
  0x3a   : > { %s717_s16 = sshll.u32 (!%p1209_p3), %s1301_s13, 3  ;;  %s280_s9 = scalar_lea.sflag (!%p1209_p3), [#allocation8], %s1301_s13 }
  0x3b   : > { %s283_s17 = scalar_lea.vmem (!%p1209_p3), [#allocation7], %s717_s16 }
  0x3d   : > { %1044 = dma.done.wait (%p1245_p13), %s280_s9, 128  }
  0x3e   : > { %1046 = vsyncadd (%p1245_p13), %s280_s9, 4294967168  ;;  %s289_s8 = sand.u32 1, %s1201_s29   ;;  %s291_s11 = sand.u32 1, %s1069_s19  }
  0x3f   : > { %s290_s14 = scalar_lea.sflag [#allocation12], %s289_s8  ;;  %s292_s30 = scalar_lea.vmem [#allocation11], %s291_s11 }
  0x40   : > { %1048 = dma.done.wait (%p1288_p5), %s290_s14, 16  }
  0x41   : > { %1050 = vsyncadd (%p1288_p5), %s290_s14, 4294967280 }
  0x42   : > { %1052 = dma.done.wait (%p69_p1), [#allocation12], 512  }
  0x43   : > { %1054 = vsyncadd (%p69_p1), [#allocation12], 4294966784 }
  0x44   : > { %1056 = dma.done.wait (%p69_p1), [#allocation10], 16  }
  0x45   : > { %1058 = vsyncadd (%p69_p1), [#allocation10], 4294967280 }
  0x46   : > { %308 = sfence }
  0x47   : > { %v346_v0 = vld [vmem:[%s283_s17] sm:$0xff]  ;;  %s1111_s10 = smov 8   ;;  %s1112_s29 = smov 16   ;;  %v451_v42 = vld [vmem:[#allocation13] sm:$0xff]  ;;  %vm454_vm0 = vcmask 64512  }
  0x48   : > { %v345_v1 = vld [vmem:[%s292_s30] sm:$0x1]  ;;  %379 = vrot.lane.b32.xlu0 %v346_v0, %s1111_s10  ;;  %s1113_s21 = smov 32   ;;  %s1114_s7 = smov 64   ;;  %496 = vmatpush.msra.mxu1 %v451_v42  ;;  %v502_v43 = vld [vmem:[#allocation13 + $0x10] sm:$0xff]  ;;  %v528_v45 = vld [vmem:[#allocation13 + $0x18] sm:$0xff] }
  0x49   : > { %v864_v2 = vld [vmem:[%s292_s30] ss:$0 sm:$0xff]  ;;  %v347_v3 = vsub.f32 1.0, %v345_v1  ;;  %521 = vmatpush.msra.mxu2 %v502_v43  ;;  %547 = vmatpush.msra.mxu3 %v528_v45  ;;  %s377_s15 = sld [smem:[#allocation14 + %s1093_s25]]  ;;  %s726_s2 = sshll.u32 %s1093_s25, 1 }
  0x4a   : > { %v352_v4 = vmul.f32 %v864_v2, %v346_v0  ;;  %v453_v44 = vld [vmem:[#allocation13 + $0x8] sm:$0xff]  ;;  %s570_s23 = sadd.s32 %s1089_s24, %s726_s2  ;;  %s334_s25 = scalar_lea.vmem [#allocation15], %s717_s16 }
  0x4b   : > { %v348_v5 = vmul.f32 100000.0, %v347_v3  ;;  %473 = vmatpush.msra.mxu0 %v453_v44  ;;  %s727_s6 = sshll.u32 %s570_s23, 3  ;;  %s574_s24 = sshll.u32 %s334_s25, 4  ;;  %s575_s24 = int_to_ptr.vmem [resolvable:$true] %s574_s24 }
  0x4c   : > { %v360_v6 = vmul.f32 %v352_v4, %v346_v0  ;;  %s572_s17 = scalar_lea.hbm %s1393_s5, %s727_s6  ;;  %s560_s30 = scalar_lea.sflag [#allocation9], %s1301_s13 }
  0x4d   : > { %v365_v7 = vperm.slane %v348_v5, 0  ;;  %v865_v5 = vld [vmem:[%s1391_s3] ss:$0 sm:$0xff]  ;;  %s576_s14 = sshll.u32 %s572_s17, 4  ;;  %s577_s14 = int_to_ptr.hbm [resolvable:$true] %s576_s14 }
  0x4e   : > { %405 = vrot.lane.b32.xlu1 %v360_v6, %s1111_s10 }
  0x4f   : > { %v371_v8 = vsub.f32 %v346_v0, %v365_v7  ;;  %v367_v9 = vadd.f32 %v365_v7, %v346_v0  ;;  %v443_v46 = vstv %s377_s15  ;;  %s991_s15 = scalar_lea.hbm %s1393_s5, 32 }
  0x50   : > { %392 = vrot.lane.b32.xlu0 %v352_v4, %s1111_s10 }
  0x51   : > { %v368_v10 = vmin.f32 %v367_v9, 1e+30  ;;  %v372_v11 = vmax.f32 %v371_v8, -1e+30 }
  0x53   : > { %418 = vrot.lane.b32.xlu2 %v368_v10, %s1111_s10 }
  0x56   : > { %431 = vrot.lane.b32.xlu1 %v372_v11, %s1111_s10  ;;  %s985_s10 = sshra.s32 %s577_s14, 4  ;;  %s986_s10 = int_to_ptr.hbm [resolvable:$true] %s985_s10 }
  0x57   : > { %p992_p13 = scmp.lt.s32.totalorder %s986_s10, %s1393_s5 }
  0xad   : > { %v419_v18 = vpop.permute.xlu2 %418 }
  0xae   : > { %v420_v21 = vmin.f32 %v368_v10, %v419_v18 }
  0xba   : > { %v380_v12 = vpop.permute.xlu0 %379 }
  0xbb   : > { %v381_v13 = vadd.f32 %v380_v12, %v346_v0 }
  0xbd   : > { %382 = vrot.lane.b32.xlu2 %v381_v13, %s1112_s29 }
  0xc0   : > { %v406_v14 = vpop.permute.xlu1 %405 }
  0xc1   : > { %v407_v15 = vadd.f32 %v406_v14, %v360_v6 }
  0xc2   : > { %v393_v16 = vpop.permute.xlu0 %392 }
  0xc3   : > { %408 = vrot.lane.b32.xlu1 %v407_v15, %s1112_s29  ;;  %v394_v17 = vadd.f32 %v393_v16, %v352_v4 }
  0xc5   : > { %395 = vrot.lane.b32.xlu0 %v394_v17, %s1112_s29 }
  0xc8   : > { %v432_v19 = vpop.permute.xlu1 %431 }
  0xc9   : > { %v433_v20 = vmax.f32 %v372_v11, %v432_v19 }
  0xcb   : > { %434 = vrot.lane.b32.xlu2 %v433_v20, %s1112_s29 }
  0xcd   : > { %421 = vrot.lane.b32.xlu0 %v420_v21, %s1112_s29  ;;  %s987_s29 = scalar_lea.hbm %s986_s10, 8 }
  0xce   : > { %p988_p1 = scmp.ne.s32.totalorder %s986_s10, %s987_s29  ;;  %p993_p4 = scmp.lt.s32.totalorder %s991_s15, %s987_s29 }
  0xd0   : > { %p989_p3 = pnand %p988_p1, %p1249_p0  ;;  %p994_p9 = por %p993_p4, %p992_p13 }
  0xd2   : > { %p990_p8 = pneg %p989_p3 }
  0xd4   : > { %p995_p7 = pnand %p994_p9, %p990_p8 }
 0x117   : > { %v383_v22 = vpop.permute.xlu2 %382 }
 0x118   : > { %v384_v23 = vadd.f32 %v383_v22, %v381_v13 }
 0x11a   : > { %385 = vrot.lane.b32.xlu1 %v384_v23, %s1113_s21 }
 0x125   : > { %v435_v24 = vpop.permute.xlu2 %434 }
 0x126   : > { %v436_v25 = vmax.f32 %v433_v20, %v435_v24 }
 0x128   : > { %437 = vrot.lane.b32.xlu1 %v436_v25, %s1113_s21 }
 0x135   : > { %v409_v26 = vpop.permute.xlu1 %408 }
 0x136   : > { %v410_v27 = vadd.f32 %v409_v26, %v407_v15 }
 0x137   : > { %v396_v28 = vpop.permute.xlu0 %395 }
 0x138   : > { %411 = vrot.lane.b32.xlu0 %v410_v27, %s1113_s21  ;;  %v397_v29 = vadd.f32 %v396_v28, %v394_v17 }
 0x13a   : > { %398 = vrot.lane.b32.xlu2 %v397_v29, %s1113_s21 }
 0x13f   : > { %v422_v30 = vpop.permute.xlu0 %421 }
 0x140   : > { %v423_v31 = vmin.f32 %v420_v21, %v422_v30 }
 0x142   : > { %424 = vrot.lane.b32.xlu2 %v423_v31, %s1113_s21 }
 0x18c   : > { %v386_v32 = vpop.permute.xlu1 %385 }
 0x18d   : > { %v387_v33 = vadd.f32 %v386_v32, %v384_v23 }
 0x18f   : > { %388 = vrot.lane.b32.xlu0 %v387_v33, %s1114_s7 }
 0x194   : > { %v399_v34 = vpop.permute.xlu2 %398 }
 0x195   : > { %v400_v35 = vadd.f32 %v399_v34, %v397_v29 }
 0x197   : > { %401 = vrot.lane.b32.xlu1 %v400_v35, %s1114_s7 }
 0x19a   : > { %v438_v36 = vpop.permute.xlu1 %437 }
 0x19b   : > { %v439_v37 = vmax.f32 %v436_v25, %v438_v36 }
 0x19c   : > { %v425_v38 = vpop.permute.xlu2 %424 }
 0x19d   : > { %440 = vrot.lane.b32.xlu0 %v439_v37, %s1114_s7  ;;  %v426_v39 = vmin.f32 %v423_v31, %v425_v38 }
 0x19f   : > { %427 = vrot.lane.b32.xlu1 %v426_v39, %s1114_s7 }
 0x1aa   : > { %v412_v40 = vpop.permute.xlu0 %411 }
 0x1ab   : > { %v413_v41 = vadd.f32 %v412_v40, %v410_v27 }
 0x1ad   : > { %414 = vrot.lane.b32.xlu2 %v413_v41, %s1114_s7 }
 0x201   : > { %v389_v47 = vpop.permute.xlu0 %388 }
 0x202   : > { %v390_v48 = vadd.f32 %v389_v47, %v387_v33 }
 0x204   : > { %v444_v49 = vmul.f32 %v443_v46, %v390_v48 }
 0x206   : > { %722 = vmatmul.msk.f32.vlgmr.msra.gmra.mxu1 %vm454_vm0, %v444_v49  ;;  %v445_v52 = vmul.f32 2.0, %v444_v49  ;;  %v449_v60 = vmul.f32 %v444_v49, %v444_v49 }
 0x207   : > { %v415_v50 = vpop.permute.xlu2 %414 }
 0x208   : > { %v416_v54 = vadd.f32 %v415_v50, %v413_v41 }
 0x209   : > { %v402_v51 = vpop.permute.xlu1 %401 }
 0x20a   : > { %v403_v53 = vadd.f32 %v402_v51, %v400_v35 }
 0x20c   : > { %v446_v55 = vmul.f32 %v445_v52, %v403_v53 }
 0x20e   : > { %v447_v56 = vsub.f32 %v416_v54, %v446_v55 }
 0x20f   : > { %v441_v57 = vpop.permute.xlu0 %440 }
 0x210   : > { %v442_v58 = vmax.f32 %v439_v37, %v441_v57  ;;  %v448_v59 = vmul.f32 %v447_v56, %v443_v46 }
 0x211   : > { %v428_v61 = vpop.permute.xlu1 %427 }
 0x212   : > { %723 = vmatmul.msk.f32.vlgmr.msra.gmra.mxu2 %vm454_vm0, %v442_v58  ;;  %v429_v62 = vmin.f32 %v426_v39, %v428_v61  ;;  %v450_v63 = vadd.f32 %v449_v60, %v448_v59 }
 0x214   : > { %721 = vmatmul.msk.f32.vlgmr.msra.gmra.mxu0 %vm454_vm0, %v429_v62  ;;  %724 = vmatmul.msk.f32.vlgmr.msra.gmra.mxu3 %vm454_vm0, %v450_v63 }
 0x283   : > { %v498_v0 = vpop.f32.mrf.mxu1 }
 0x291   : > { %v475_v1 = vpop.f32.mrf.mxu0 }
 0x292   : > { %v499_v2 = vadd.f32 %v498_v0, %v475_v1 }
 0x295   : > { %v523_v3 = vpop.f32.mrf.mxu2 }
 0x296   : > { %v526_v4 = vadd.f32 %v523_v3, %v499_v2 }
 0x297   : > { %v549_v6 = vpop.f32.mrf.mxu3 }
 0x298   : > { %v552_v7 = vadd.f32 %v549_v6, %v526_v4 }
 0x29a   : > { %v557_v8 = vadd.f32 %v865_v5, %v552_v7 }
 0x29c   : > { %558 = vst [vmem:[%s334_s25] sm:$0xff] %v557_v8 }
 0x29d   : > { %998 = shalt.err (!%p995_p7)
}
 0x29e   : > { %742 = dma.vmem_to_hbm [thread:$0]  (%p1249_p0), %s575_s24, 128, %s577_s14, %s560_s30  }
 0x29f PF: > { %s1415_s13 = sld [smem:[#allocation21_spill]]  ;;  %p767_p10 = scmp.ge.s32.totalorder %s1105_s28, 2 }
 0x2a1   : > { %p759_p12 = pnand %p767_p10, %p1255_p6 }
 0x2a3   : > { %p760_p2 = pneg %p759_p12 }
 0x2a5   : > { %s588_s6 = sand.u32 1, %s1415_s13  }
 0x2a6   : > { %s589_s18 = scalar_lea.sflag [#allocation9], %s588_s6 }
 0x2a7   : > { %1060 = dma.done.wait (%p760_p2), %s589_s18, 128  }
 0x2a8   : > { %1062 = vsyncadd (%p760_p2), %s589_s18, 4294967168  ;;  %s25_s28 = sadd.s32 1, %s1105_s28   ;;  %s1417_s12 = sld [smem:[#allocation22_spill]] }
 0x2a9   : > { %p22_p5 = scmp.ge.s32.totalorder %s25_s28, 6   ;;  %s1418_s23 = sld [smem:[#allocation26_spill]] }
 0x2aa   : > { %s1419_s9 = sld [smem:[#allocation23_spill]]  ;;  %s1421_s18 = smov %s1069_s19 }
 0x2ab   : > { %s1420_s17 = sld [smem:[#allocation24_spill]]  ;;  %s1422_s19 = smov %s1073_s20 }
 0x2ac   : > { %s1423_s20 = smov %s1276_s4  ;;  %s1424_s21 = smov %s1081_s22 }
 0x2ad   : > { %s1426_s24 = smov %s1097_s26  ;;  %s1427_s25 = smov %s1101_s27 }
 0x2ae   : > { %s1425_s22 = smov %s1417_s12  ;;  %24 = sbr.rel (!%p22_p5) target bundleno = 15 (0xf), region = 119 }
 0x2b0   : > { %s1428_s26 = smov %s1419_s9 }
 0x2b1   : > { %s1429_s27 = smov %s1420_s17 }
 0x2b3   :  { %595 = vsyncpa [#allocation8], 1 }
 0x2b4   :  { %597 = vsyncpa [#allocation8 + $0x1], 1 }
 0x2b5   :  { %598 = vsyncpa [#allocation12], 1 }
 0x2b6   :  { %600 = vsyncpa [#allocation12 + $0x1], 1 }
 0x2b7   :  { %601 = vsyncpa [#allocation9], 1 }
 0x2b8   :  { %603 = vsyncpa [#allocation9 + $0x1], 1 }
 0x2b9   :  { %604 = vsyncpa [#allocation10], 1 }
 0x2ba   :  { %606 = vsyncpa [#allocation10 + $0x1], 1 }

</bundles_post_ra>
